<compile_context>
chip_gen: v7x
topology: tpu7x:2x2x1
jax: 0.10.0
libtpu: 0.0.40
codegen_flags: <defaults>
</compile_context>

<pallas_src>
import jax
import jax.numpy as jnp
from jax import lax
from jax.experimental import pallas as pl
from jax.experimental.pallas import tpu as pltpu


def _build_kernel(N, H, W, C, t):
    L = N * W * C
    inv_M = 1.0 / float(N * H * W)   # elements per channel for BN statistics
    eps = 1e-5                       # PyTorch BatchNorm2d default

    def kernel(x_ref, wb_ref, gmat_ref, gamma_ref, beta_ref, out_ref):
        # x_ref     : (H, L)    bf16  lane-dense input x, lane = n*(W*C) + w*C + c
        # wb_ref    : (3, L, L) bf16  banded, batch-block-diagonal conv weights (one per row tap)
        # gmat_ref  : (L, L)    f32   channel-indicator matrix for BN per-channel reduce+broadcast
        # gamma/beta: (1, L)    f32   BN affine params tiled to the lane layout
        xb = x_ref[...]
        wb0, wb1, wb2 = wb_ref[0], wb_ref[1], wb_ref[2]   # hoisted once, reused every step
        gmat = gmat_ref[...]
        gl = gamma_ref[...]
        bl = beta_ref[...]

        # Exact row-shift operators for the +-1 row taps of the 3x3 conv ("same" padding in H):
        #   (s_up @ m)[y] = m[y-1]  (row 0 -> 0),   (s_dn @ m)[y] = m[y+1]  (row H-1 -> 0).
        rows = lax.broadcasted_iota(jnp.int32, (H, H), 0)
        cols = lax.broadcasted_iota(jnp.int32, (H, H), 1)
        s_up = (cols == rows - 1).astype(jnp.float32)
        s_dn = (cols == rows + 1).astype(jnp.float32)

        def conv_lin(sb):
            # sb: (H, L) bf16.  Column ("same" W) padding is folded into the banded weights.
            m0 = jnp.dot(sb, wb0, preferred_element_type=jnp.float32)
            m1 = jnp.dot(sb, wb1, preferred_element_type=jnp.float32)
            m2 = jnp.dot(sb, wb2, preferred_element_type=jnp.float32)
            return (m1
                    + jnp.dot(s_up, m0, preferred_element_type=jnp.float32)
                    + jnp.dot(s_dn, m2, preferred_element_type=jnp.float32))

        def bn_relu(acc):
            # acc: (H, L) f32 conv output.  Train-mode BatchNorm + ReLU, all stats in f32.
            s1 = jnp.sum(acc, axis=0, keepdims=True)          # (1, L) sum over H
            s2 = jnp.sum(acc * acc, axis=0, keepdims=True)    # (1, L) sum of squares over H
            # NOTE: kept as two M=1 dots rather than one stacked (2,L) dot: a 1-row sublane
            # concat is a sub-tile relayout Mosaic may reject, and the MXU is nowhere near
            # binding at this size.
            mean = jnp.dot(s1, gmat, preferred_element_type=jnp.float32) * inv_M
            ex2 = jnp.dot(s2, gmat, preferred_element_type=jnp.float32) * inv_M
            # TODO(synk): single-pass E[x^2]-mean^2 variance; prefer the centered form if
            # |mean| >> std at production scale.
            var = ex2 - mean * mean
            scale = lax.rsqrt(var + eps) * gl                 # EUP rsqrt
            y = (acc - mean) * scale + bl
            return jnp.maximum(y, 0.0)

        # conv(x) computed once; reused every recurrent step via conv linearity.
        acc_x = conv_lin(xb)
        y = bn_relu(acc_x)                                    # i == 0: x1 = conv(x)
        # t recurrent applications, state register-resident (no scratch, no HBM round trips).
        # TODO(synk): for large t switch to lax.fori_loop(..., unroll=True) with y as the carry.
        for _ in range(t):
            y = bn_relu(acc_x + conv_lin(y.astype(jnp.bfloat16)))

        out_ref[...] = y.astype(out_ref.dtype)

    return kernel


def _make_call(N, H, W, C, t):
    L = N * W * C
    return pl.pallas_call(
        _build_kernel(N, H, W, C, t),
        out_shape=jax.ShapeDtypeStruct((H, L), jnp.float32),
        grid=(1,),
        in_specs=[
            pl.BlockSpec((H, L), lambda i: (0, 0)),          # x slab (bf16)
            pl.BlockSpec((3, L, L), lambda i: (0, 0, 0)),    # banded conv weights (bf16)
            pl.BlockSpec((L, L), lambda i: (0, 0)),          # BN channel-indicator matrix (f32)
            pl.BlockSpec((1, L), lambda i: (0, 0)),          # gamma (lane-tiled)
            pl.BlockSpec((1, L), lambda i: (0, 0)),          # beta  (lane-tiled)
        ],
        out_specs=pl.BlockSpec((H, L), lambda i: (0, 0)),
        compiler_params=pltpu.CompilerParams(
            dimension_semantics=("arbitrary",)),
    )


def recurrent_block(x_nchw, w_hwio, b, gamma, beta, t=2):
    """Pallas port of Recurrent_block.forward. x_nchw: (N, C, H, W), w_hwio: (3,3,Cin,Cout)."""
    del b  # conv bias is exactly cancelled by the train-mode BatchNorm that follows it
    N, C, H, W = x_nchw.shape
    WC = W * C
    L = N * WC

    # lane-dense slab (H, N*W*C); lane index = n*(W*C) + w*C + c
    x_slab = jnp.transpose(x_nchw, (2, 0, 3, 1)).reshape(H, L).astype(jnp.bfloat16)

    # banded, batch-block-diagonal weights:
    #   W_band[ky, n*WC + xin*C + ci, n*WC + xout*C + co] = w[ky, xin-xout+1, ci, co] if tap exists
    j = jnp.arange(L)
    k = jnp.arange(L)
    nj, nk = j[:, None] // WC, k[None, :] // WC
    rj, rk = j[:, None] % WC, k[None, :] % WC
    xin, ci = rj // C, rj % C
    xout, co = rk // C, rk % C
    dx = xin - xout + 1
    valid = (nj == nk) & (dx >= 0) & (dx <= 2)
    w_tap = w_hwio.astype(jnp.float32)[:, jnp.clip(dx, 0, 2), ci, co]          # (3, L, L)
    w_band = jnp.where(valid[None, :, :], w_tap, 0.0).astype(jnp.bfloat16)

    # channel-group indicator: (s @ g_mat)[k] = sum over all lanes (any n, any w) sharing k's channel
    g_mat = (ci == co).astype(jnp.float32)                                     # (L, L)

    gamma_l = jnp.tile(gamma.reshape(1, C).astype(jnp.float32), (1, N * W))    # (1, L)
    beta_l = jnp.tile(beta.reshape(1, C).astype(jnp.float32), (1, N * W))      # (1, L)

    out = _make_call(N, H, W, C, t)(x_slab, w_band, g_mat, gamma_l, beta_l)    # (H, L) f32
    out = out.reshape(H, N, W, C)
    return jnp.transpose(out, (1, 3, 0, 2)).astype(x_nchw.dtype)               # -> (N, C, H, W)


def _reference(x_nchw, w, b, gamma, beta, t=2):
    """Pure-JAX reference (same math, XLA conv, bias included) for correctness check."""
    x = jnp.transpose(x_nchw, (0, 2, 3, 1))

    def conv(s):
        c = lax.conv_general_dilated(
            s, w, (1, 1), "SAME",
            dimension_numbers=("NHWC", "HWIO", "NHWC"))
        c = c + b.reshape(1, 1, 1, -1)
        mean = jnp.mean(c, axis=(0, 1, 2), keepdims=True)
        var = jnp.mean(jnp.square(c - mean), axis=(0, 1, 2), keepdims=True)
        y = (c - mean) * lax.rsqrt(var + 1e-5)
        y = y * gamma.reshape(1, 1, 1, -1) + beta.reshape(1, 1, 1, -1)
        return jnp.maximum(y, 0.0)

    x1 = conv(x)
    for _ in range(t):
        x1 = conv(x + x1)
    return jnp.transpose(x1, (0, 3, 1, 2))


if __name__ == "__main__":
    key = jax.random.PRNGKey(0)
    kx, kw, kb, kg, kbeta = jax.random.split(key, 5)

    N, C, H, W, t = 2, 4, 16, 16, 2                 # ch_out = 4, t = 2
    x = jax.random.normal(kx, (N, C, H, W), jnp.float32)

    # deterministic parameter init (shapes from nn.Conv2d(C, C, 3) + nn.BatchNorm2d(C))
    fan_in = 9 * C
    w = jax.random.normal(kw, (3, 3, C, C), jnp.float32) / jnp.sqrt(fan_in)    # HWIO
    b = 0.1 * jax.random.normal(kb, (1, C), jnp.float32)
    gamma = 1.0 + 0.1 * jax.random.normal(kg, (1, C), jnp.float32)
    beta = 0.1 * jax.random.normal(kbeta, (1, C), jnp.float32)

    out = jax.block_until_ready(recurrent_block(x, w, b, gamma, beta, t=t))
    ref = jax.block_until_ready(_reference(x, w, b, gamma, beta, t=t))

    assert out.shape == (N, C, H, W) and out.dtype == jnp.float32
    err = float(jnp.max(jnp.abs(out - ref)))
    # bf16 MXU operands in the kernel (and default-precision conv in the XLA reference).
    assert jnp.allclose(out, ref, atol=3e-2, rtol=3e-2), err
    print("KERNEL_OK")
</pallas_src>

<mosaic_0001>
module attributes {stable_mosaic.version = 11 : i64} {
  func.func @kernel(%arg0: i32, %arg1: memref<16x128xbf16, #tpu.memory_space<vmem>>, %arg2: memref<3x128x128xbf16, #tpu.memory_space<vmem>>, %arg3: memref<128x128xf32, #tpu.memory_space<vmem>>, %arg4: memref<1x128xf32, #tpu.memory_space<vmem>>, %arg5: memref<1x128xf32, #tpu.memory_space<vmem>>, %arg6: memref<16x128xf32, #tpu.memory_space<vmem>>) attributes {dimension_semantics = [#tpu.dimension_semantics<arbitrary>], iteration_bounds = array<i64: 1>, scalar_prefetch = 0 : i64, scratch_operands = 0 : i64, tpu.core_type = #tpu.core_type<tc>, window_params = [{pipeline_mode = #tpu.pipeline_mode<synchronous>, transform_indices = @transform_0, window_bounds = array<i64: 16, 128>}, {pipeline_mode = #tpu.pipeline_mode<synchronous>, transform_indices = @transform_1, window_bounds = array<i64: 3, 128, 128>}, {pipeline_mode = #tpu.pipeline_mode<synchronous>, transform_indices = @transform_2, window_bounds = array<i64: 128, 128>}, {pipeline_mode = #tpu.pipeline_mode<synchronous>, transform_indices = @transform_3, window_bounds = array<i64: 1, 128>}, {pipeline_mode = #tpu.pipeline_mode<synchronous>, transform_indices = @transform_4, window_bounds = array<i64: 1, 128>}, {pipeline_mode = #tpu.pipeline_mode<synchronous>, transform_indices = @transform_5, window_bounds = array<i64: 16, 128>}]} {
    %c0 = arith.constant 0 : index
    %c0_0 = arith.constant 0 : index
    %0 = vector.load %arg1[%c0, %c0_0] : memref<16x128xbf16, #tpu.memory_space<vmem>>, vector<16x128xbf16>
    %c0_1 = arith.constant 0 : index
    %c0_2 = arith.constant 0 : index
    %c0_3 = arith.constant 0 : index
    %1 = vector.load %arg2[%c0_1, %c0_2, %c0_3] : memref<3x128x128xbf16, #tpu.memory_space<vmem>>, vector<1x128x128xbf16>
    %2 = vector.shape_cast %1 : vector<1x128x128xbf16> to vector<128x128xbf16>
    %c1 = arith.constant 1 : index
    %c0_4 = arith.constant 0 : index
    %c0_5 = arith.constant 0 : index
    %3 = vector.load %arg2[%c1, %c0_4, %c0_5] : memref<3x128x128xbf16, #tpu.memory_space<vmem>>, vector<1x128x128xbf16>
    %4 = vector.shape_cast %3 : vector<1x128x128xbf16> to vector<128x128xbf16>
    %c2 = arith.constant 2 : index
    %c0_6 = arith.constant 0 : index
    %c0_7 = arith.constant 0 : index
    %5 = vector.load %arg2[%c2, %c0_6, %c0_7] : memref<3x128x128xbf16, #tpu.memory_space<vmem>>, vector<1x128x128xbf16>
    %6 = vector.shape_cast %5 : vector<1x128x128xbf16> to vector<128x128xbf16>
    %c0_8 = arith.constant 0 : index
    %c0_9 = arith.constant 0 : index
    %7 = vector.load %arg3[%c0_8, %c0_9] : memref<128x128xf32, #tpu.memory_space<vmem>>, vector<128x128xf32>
    %c0_10 = arith.constant 0 : index
    %c0_11 = arith.constant 0 : index
    %8 = vector.load %arg4[%c0_10, %c0_11] : memref<1x128xf32, #tpu.memory_space<vmem>>, vector<1x128xf32>
    %c0_12 = arith.constant 0 : index
    %c0_13 = arith.constant 0 : index
    %9 = vector.load %arg5[%c0_12, %c0_13] : memref<1x128xf32, #tpu.memory_space<vmem>>, vector<1x128xf32>
    %10 = tpu.iota {dimensions = array<i32: 0>} : vector<16x16xi32>
    %11 = tpu.iota {dimensions = array<i32: 1>} : vector<16x16xi32>
    %c1_i32 = arith.constant 1 : i32
    %12 = vector.broadcast %c1_i32 : i32 to vector<16x16xi32>
    %13 = arith.subi %10, %12 : vector<16x16xi32>
    %14 = arith.cmpi eq, %11, %13 : vector<16x16xi32>
    %15 = arith.extui %14 : vector<16x16xi1> to vector<16x16xi32>
    %16 = arith.sitofp %15 : vector<16x16xi32> to vector<16x16xf32>
    %c1_i32_14 = arith.constant 1 : i32
    %17 = vector.broadcast %c1_i32_14 : i32 to vector<16x16xi32>
    %18 = arith.addi %10, %17 : vector<16x16xi32>
    %19 = arith.cmpi eq, %11, %18 : vector<16x16xi32>
    %20 = arith.extui %19 : vector<16x16xi1> to vector<16x16xi32>
    %21 = arith.sitofp %20 : vector<16x16xi32> to vector<16x16xf32>
    %cst = arith.constant dense<0.000000e+00> : vector<16x128xf32>
    %22 = tpu.matmul %0, %2, %cst {dimension_numbers = #tpu.dot_dimension_numbers<[1], [0], [0], [1], [0, 0, 1, 1], [], []>} : vector<16x128xbf16>, vector<128x128xbf16>, vector<16x128xf32> -> vector<16x128xf32>
    %cst_15 = arith.constant dense<0.000000e+00> : vector<16x128xf32>
    %23 = tpu.matmul %0, %4, %cst_15 {dimension_numbers = #tpu.dot_dimension_numbers<[1], [0], [0], [1], [0, 0, 1, 1], [], []>} : vector<16x128xbf16>, vector<128x128xbf16>, vector<16x128xf32> -> vector<16x128xf32>
    %cst_16 = arith.constant dense<0.000000e+00> : vector<16x128xf32>
    %24 = tpu.matmul %0, %6, %cst_16 {dimension_numbers = #tpu.dot_dimension_numbers<[1], [0], [0], [1], [0, 0, 1, 1], [], []>} : vector<16x128xbf16>, vector<128x128xbf16>, vector<16x128xf32> -> vector<16x128xf32>
    %cst_17 = arith.constant dense<0.000000e+00> : vector<16x128xf32>
    %25 = tpu.matmul %16, %22, %cst_17 {dimension_numbers = #tpu.dot_dimension_numbers<[1], [0], [0], [1], [0, 0, 1, 1], [], []>} : vector<16x16xf32>, vector<16x128xf32>, vector<16x128xf32> -> vector<16x128xf32>
    %26 = arith.addf %23, %25 : vector<16x128xf32>
    %cst_18 = arith.constant dense<0.000000e+00> : vector<16x128xf32>
    %27 = tpu.matmul %21, %24, %cst_18 {dimension_numbers = #tpu.dot_dimension_numbers<[1], [0], [0], [1], [0, 0, 1, 1], [], []>} : vector<16x16xf32>, vector<16x128xf32>, vector<16x128xf32> -> vector<16x128xf32>
    %28 = arith.addf %26, %27 : vector<16x128xf32>
    %cst_19 = arith.constant dense<0.000000e+00> : vector<128xf32>
    %29 = vector.multi_reduction <add>, %28, %cst_19 [0] : vector<16x128xf32> to vector<128xf32>
    %30 = vector.shape_cast %29 : vector<128xf32> to vector<1x128xf32>
    %31 = arith.mulf %28, %28 : vector<16x128xf32>
    %cst_20 = arith.constant dense<0.000000e+00> : vector<128xf32>
    %32 = vector.multi_reduction <add>, %31, %cst_20 [0] : vector<16x128xf32> to vector<128xf32>
    %33 = vector.shape_cast %32 : vector<128xf32> to vector<1x128xf32>
    %cst_21 = arith.constant dense<0.000000e+00> : vector<1x128xf32>
    %34 = tpu.matmul %30, %7, %cst_21 {dimension_numbers = #tpu.dot_dimension_numbers<[1], [0], [0], [1], [0, 0, 1, 1], [], []>} : vector<1x128xf32>, vector<128x128xf32>, vector<1x128xf32> -> vector<1x128xf32>
    %cst_22 = arith.constant 0.001953125 : f32
    %35 = vector.broadcast %cst_22 : f32 to vector<1x128xf32>
    %36 = arith.mulf %34, %35 : vector<1x128xf32>
    %cst_23 = arith.constant dense<0.000000e+00> : vector<1x128xf32>
    %37 = tpu.matmul %33, %7, %cst_23 {dimension_numbers = #tpu.dot_dimension_numbers<[1], [0], [0], [1], [0, 0, 1, 1], [], []>} : vector<1x128xf32>, vector<128x128xf32>, vector<1x128xf32> -> vector<1x128xf32>
    %cst_24 = arith.constant 0.001953125 : f32
    %38 = vector.broadcast %cst_24 : f32 to vector<1x128xf32>
    %39 = arith.mulf %37, %38 : vector<1x128xf32>
    %40 = arith.mulf %36, %36 : vector<1x128xf32>
    %41 = arith.subf %39, %40 : vector<1x128xf32>
    %cst_25 = arith.constant 9.99999974E-6 : f32
    %42 = vector.broadcast %cst_25 : f32 to vector<1x128xf32>
    %43 = arith.addf %41, %42 : vector<1x128xf32>
    %44 = math.rsqrt %43 : vector<1x128xf32>
    %45 = arith.mulf %44, %8 : vector<1x128xf32>
    %46 = vector.broadcast %36 : vector<1x128xf32> to vector<16x128xf32>
    %47 = arith.subf %28, %46 : vector<16x128xf32>
    %48 = vector.broadcast %45 : vector<1x128xf32> to vector<16x128xf32>
    %49 = arith.mulf %47, %48 : vector<16x128xf32>
    %50 = vector.broadcast %9 : vector<1x128xf32> to vector<16x128xf32>
    %51 = arith.addf %49, %50 : vector<16x128xf32>
    %cst_26 = arith.constant 0.000000e+00 : f32
    %52 = vector.broadcast %cst_26 : f32 to vector<16x128xf32>
    %53 = arith.maximumf %51, %52 : vector<16x128xf32>
    %54 = arith.truncf %53 : vector<16x128xf32> to vector<16x128xbf16>
    %cst_27 = arith.constant dense<0.000000e+00> : vector<16x128xf32>
    %55 = tpu.matmul %54, %2, %cst_27 {dimension_numbers = #tpu.dot_dimension_numbers<[1], [0], [0], [1], [0, 0, 1, 1], [], []>} : vector<16x128xbf16>, vector<128x128xbf16>, vector<16x128xf32> -> vector<16x128xf32>
    %cst_28 = arith.constant dense<0.000000e+00> : vector<16x128xf32>
    %56 = tpu.matmul %54, %4, %cst_28 {dimension_numbers = #tpu.dot_dimension_numbers<[1], [0], [0], [1], [0, 0, 1, 1], [], []>} : vector<16x128xbf16>, vector<128x128xbf16>, vector<16x128xf32> -> vector<16x128xf32>
    %cst_29 = arith.constant dense<0.000000e+00> : vector<16x128xf32>
    %57 = tpu.matmul %54, %6, %cst_29 {dimension_numbers = #tpu.dot_dimension_numbers<[1], [0], [0], [1], [0, 0, 1, 1], [], []>} : vector<16x128xbf16>, vector<128x128xbf16>, vector<16x128xf32> -> vector<16x128xf32>
    %cst_30 = arith.constant dense<0.000000e+00> : vector<16x128xf32>
    %58 = tpu.matmul %16, %55, %cst_30 {dimension_numbers = #tpu.dot_dimension_numbers<[1], [0], [0], [1], [0, 0, 1, 1], [], []>} : vector<16x16xf32>, vector<16x128xf32>, vector<16x128xf32> -> vector<16x128xf32>
    %59 = arith.addf %56, %58 : vector<16x128xf32>
    %cst_31 = arith.constant dense<0.000000e+00> : vector<16x128xf32>
    %60 = tpu.matmul %21, %57, %cst_31 {dimension_numbers = #tpu.dot_dimension_numbers<[1], [0], [0], [1], [0, 0, 1, 1], [], []>} : vector<16x16xf32>, vector<16x128xf32>, vector<16x128xf32> -> vector<16x128xf32>
    %61 = arith.addf %59, %60 : vector<16x128xf32>
    %62 = arith.addf %28, %61 : vector<16x128xf32>
    %cst_32 = arith.constant dense<0.000000e+00> : vector<128xf32>
    %63 = vector.multi_reduction <add>, %62, %cst_32 [0] : vector<16x128xf32> to vector<128xf32>
    %64 = vector.shape_cast %63 : vector<128xf32> to vector<1x128xf32>
    %65 = arith.mulf %62, %62 : vector<16x128xf32>
    %cst_33 = arith.constant dense<0.000000e+00> : vector<128xf32>
    %66 = vector.multi_reduction <add>, %65, %cst_33 [0] : vector<16x128xf32> to vector<128xf32>
    %67 = vector.shape_cast %66 : vector<128xf32> to vector<1x128xf32>
    %cst_34 = arith.constant dense<0.000000e+00> : vector<1x128xf32>
    %68 = tpu.matmul %64, %7, %cst_34 {dimension_numbers = #tpu.dot_dimension_numbers<[1], [0], [0], [1], [0, 0, 1, 1], [], []>} : vector<1x128xf32>, vector<128x128xf32>, vector<1x128xf32> -> vector<1x128xf32>
    %cst_35 = arith.constant 0.001953125 : f32
    %69 = vector.broadcast %cst_35 : f32 to vector<1x128xf32>
    %70 = arith.mulf %68, %69 : vector<1x128xf32>
    %cst_36 = arith.constant dense<0.000000e+00> : vector<1x128xf32>
    %71 = tpu.matmul %67, %7, %cst_36 {dimension_numbers = #tpu.dot_dimension_numbers<[1], [0], [0], [1], [0, 0, 1, 1], [], []>} : vector<1x128xf32>, vector<128x128xf32>, vector<1x128xf32> -> vector<1x128xf32>
    %cst_37 = arith.constant 0.001953125 : f32
    %72 = vector.broadcast %cst_37 : f32 to vector<1x128xf32>
    %73 = arith.mulf %71, %72 : vector<1x128xf32>
    %74 = arith.mulf %70, %70 : vector<1x128xf32>
    %75 = arith.subf %73, %74 : vector<1x128xf32>
    %cst_38 = arith.constant 9.99999974E-6 : f32
    %76 = vector.broadcast %cst_38 : f32 to vector<1x128xf32>
    %77 = arith.addf %75, %76 : vector<1x128xf32>
    %78 = math.rsqrt %77 : vector<1x128xf32>
    %79 = arith.mulf %78, %8 : vector<1x128xf32>
    %80 = vector.broadcast %70 : vector<1x128xf32> to vector<16x128xf32>
    %81 = arith.subf %62, %80 : vector<16x128xf32>
    %82 = vector.broadcast %79 : vector<1x128xf32> to vector<16x128xf32>
    %83 = arith.mulf %81, %82 : vector<16x128xf32>
    %84 = vector.broadcast %9 : vector<1x128xf32> to vector<16x128xf32>
    %85 = arith.addf %83, %84 : vector<16x128xf32>
    %cst_39 = arith.constant 0.000000e+00 : f32
    %86 = vector.broadcast %cst_39 : f32 to vector<16x128xf32>
    %87 = arith.maximumf %85, %86 : vector<16x128xf32>
    %88 = arith.truncf %87 : vector<16x128xf32> to vector<16x128xbf16>
    %cst_40 = arith.constant dense<0.000000e+00> : vector<16x128xf32>
    %89 = tpu.matmul %88, %2, %cst_40 {dimension_numbers = #tpu.dot_dimension_numbers<[1], [0], [0], [1], [0, 0, 1, 1], [], []>} : vector<16x128xbf16>, vector<128x128xbf16>, vector<16x128xf32> -> vector<16x128xf32>
    %cst_41 = arith.constant dense<0.000000e+00> : vector<16x128xf32>
    %90 = tpu.matmul %88, %4, %cst_41 {dimension_numbers = #tpu.dot_dimension_numbers<[1], [0], [0], [1], [0, 0, 1, 1], [], []>} : vector<16x128xbf16>, vector<128x128xbf16>, vector<16x128xf32> -> vector<16x128xf32>
    %cst_42 = arith.constant dense<0.000000e+00> : vector<16x128xf32>
    %91 = tpu.matmul %88, %6, %cst_42 {dimension_numbers = #tpu.dot_dimension_numbers<[1], [0], [0], [1], [0, 0, 1, 1], [], []>} : vector<16x128xbf16>, vector<128x128xbf16>, vector<16x128xf32> -> vector<16x128xf32>
    %cst_43 = arith.constant dense<0.000000e+00> : vector<16x128xf32>
    %92 = tpu.matmul %16, %89, %cst_43 {dimension_numbers = #tpu.dot_dimension_numbers<[1], [0], [0], [1], [0, 0, 1, 1], [], []>} : vector<16x16xf32>, vector<16x128xf32>, vector<16x128xf32> -> vector<16x128xf32>
    %93 = arith.addf %90, %92 : vector<16x128xf32>
    %cst_44 = arith.constant dense<0.000000e+00> : vector<16x128xf32>
    %94 = tpu.matmul %21, %91, %cst_44 {dimension_numbers = #tpu.dot_dimension_numbers<[1], [0], [0], [1], [0, 0, 1, 1], [], []>} : vector<16x16xf32>, vector<16x128xf32>, vector<16x128xf32> -> vector<16x128xf32>
    %95 = arith.addf %93, %94 : vector<16x128xf32>
    %96 = arith.addf %28, %95 : vector<16x128xf32>
    %cst_45 = arith.constant dense<0.000000e+00> : vector<128xf32>
    %97 = vector.multi_reduction <add>, %96, %cst_45 [0] : vector<16x128xf32> to vector<128xf32>
    %98 = vector.shape_cast %97 : vector<128xf32> to vector<1x128xf32>
    %99 = arith.mulf %96, %96 : vector<16x128xf32>
    %cst_46 = arith.constant dense<0.000000e+00> : vector<128xf32>
    %100 = vector.multi_reduction <add>, %99, %cst_46 [0] : vector<16x128xf32> to vector<128xf32>
    %101 = vector.shape_cast %100 : vector<128xf32> to vector<1x128xf32>
    %cst_47 = arith.constant dense<0.000000e+00> : vector<1x128xf32>
    %102 = tpu.matmul %98, %7, %cst_47 {dimension_numbers = #tpu.dot_dimension_numbers<[1], [0], [0], [1], [0, 0, 1, 1], [], []>} : vector<1x128xf32>, vector<128x128xf32>, vector<1x128xf32> -> vector<1x128xf32>
    %cst_48 = arith.constant 0.001953125 : f32
    %103 = vector.broadcast %cst_48 : f32 to vector<1x128xf32>
    %104 = arith.mulf %102, %103 : vector<1x128xf32>
    %cst_49 = arith.constant dense<0.000000e+00> : vector<1x128xf32>
    %105 = tpu.matmul %101, %7, %cst_49 {dimension_numbers = #tpu.dot_dimension_numbers<[1], [0], [0], [1], [0, 0, 1, 1], [], []>} : vector<1x128xf32>, vector<128x128xf32>, vector<1x128xf32> -> vector<1x128xf32>
    %cst_50 = arith.constant 0.001953125 : f32
    %106 = vector.broadcast %cst_50 : f32 to vector<1x128xf32>
    %107 = arith.mulf %105, %106 : vector<1x128xf32>
    %108 = arith.mulf %104, %104 : vector<1x128xf32>
    %109 = arith.subf %107, %108 : vector<1x128xf32>
    %cst_51 = arith.constant 9.99999974E-6 : f32
    %110 = vector.broadcast %cst_51 : f32 to vector<1x128xf32>
    %111 = arith.addf %109, %110 : vector<1x128xf32>
    %112 = math.rsqrt %111 : vector<1x128xf32>
    %113 = arith.mulf %112, %8 : vector<1x128xf32>
    %114 = vector.broadcast %104 : vector<1x128xf32> to vector<16x128xf32>
    %115 = arith.subf %96, %114 : vector<16x128xf32>
    %116 = vector.broadcast %113 : vector<1x128xf32> to vector<16x128xf32>
    %117 = arith.mulf %115, %116 : vector<16x128xf32>
    %118 = vector.broadcast %9 : vector<1x128xf32> to vector<16x128xf32>
    %119 = arith.addf %117, %118 : vector<16x128xf32>
    %cst_52 = arith.constant 0.000000e+00 : f32
    %120 = vector.broadcast %cst_52 : f32 to vector<16x128xf32>
    %121 = arith.maximumf %119, %120 : vector<16x128xf32>
    %c0_53 = arith.constant 0 : index
    %c0_54 = arith.constant 0 : index
    %122 = vector.load %arg6[%c0_53, %c0_54] : memref<16x128xf32, #tpu.memory_space<vmem>>, vector<16x128xf32>
    tpu.vector_store %arg6[%c0_53, %c0_54], %121 {strides = array<i32>} : memref<16x128xf32, #tpu.memory_space<vmem>>, vector<16x128xf32>,
    return
  }
  func.func @transform_0(%arg0: i32) -> (i32, i32) {
    %c0_i32 = arith.constant 0 : i32
    %c0_i32_0 = arith.constant 0 : i32
    %c0_i32_1 = arith.constant 0 : i32
    return %c0_i32, %c0_i32_0 : i32, i32
  }
  func.func @transform_1(%arg0: i32) -> (i32, i32, i32) {
    %c0_i32 = arith.constant 0 : i32
    %c0_i32_0 = arith.constant 0 : i32
    %c0_i32_1 = arith.constant 0 : i32
    %c0_i32_2 = arith.constant 0 : i32
    return %c0_i32, %c0_i32_0, %c0_i32_1 : i32, i32, i32
  }
  func.func @transform_2(%arg0: i32) -> (i32, i32) {
    %c0_i32 = arith.constant 0 : i32
    %c0_i32_0 = arith.constant 0 : i32
    %c0_i32_1 = arith.constant 0 : i32
    return %c0_i32, %c0_i32_0 : i32, i32
  }
  func.func @transform_3(%arg0: i32) -> (i32, i32) {
    %c0_i32 = arith.constant 0 : i32
    %c0_i32_0 = arith.constant 0 : i32
    %c0_i32_1 = arith.constant 0 : i32
    return %c0_i32, %c0_i32_0 : i32, i32
  }
  func.func @transform_4(%arg0: i32) -> (i32, i32) {
    %c0_i32 = arith.constant 0 : i32
    %c0_i32_0 = arith.constant 0 : i32
    %c0_i32_1 = arith.constant 0 : i32
    return %c0_i32, %c0_i32_0 : i32, i32
  }
  func.func @transform_5(%arg0: i32) -> (i32, i32) {
    %c0_i32 = arith.constant 0 : i32
    %c0_i32_0 = arith.constant 0 : i32
    %c0_i32_1 = arith.constant 0 : i32
    return %c0_i32, %c0_i32_0 : i32, i32
  }
}

</mosaic_0001>

<bundles_post_ra>
// kernel: tpu_custom_call.1
= control target key start
LH: loop header
LB: loop body
LE: loop exit
PB: predicated region body
PF: predicated region fallthrough
CT: control target
= control target key end

     0   :  { %10 = vsyncpa [#allocation3], 0  ;;  %s3231_s0 = inlined_call_operand.hbm [shape: bf16[16,128], index: 0, kind: input, shape index: {}]   ;;  %s3232_s1 = inlined_call_operand.hbm [shape: bf16[3,128,128], index: 1, kind: input, shape index: {}]   ;;  %s3233_s2 = inlined_call_operand.hbm [shape: f32[128,128], index: 2, kind: input, shape index: {}]   ;;  %s3234_s3 = inlined_call_operand.vmem [shape: f32[1,128], index: 3, kind: input, shape index: {}]   ;;  %s3235_s4 = inlined_call_operand.vmem [shape: f32[1,128], index: 4, kind: input, shape index: {}]   ;;  %s3236_s5 = inlined_call_operand.hbm [shape: f32[16,128], index: 5, kind: output, shape index: {}]  }
   0x1   :  { %11 = vsyncpa [#allocation6], 0 }
   0x2   :  { %12 = vsyncpa [#allocation4], 0  ;;  %s2698_s18 = smov [#allocation5]   ;;  %s2699_s20 = smov [#allocation2]  }
   0x3   :  { %s30_s19 = sshll.u32 %s2698_s18, 4  ;;  %s18_s21 = sshll.u32 %s2699_s20, 4  ;;  %s31_s19 = int_to_ptr.vmem [resolvable:$true] %s30_s19  ;;  %s2739_s21 = int_to_ptr.vmem [resolvable:$true] %s18_s21 }
   0x4   :  { %s2604_s24 = scalar_lea.hbm %s3232_s1, 3072 }
   0x5   :  { %p2605_p0 = scmp.ne.s32.totalorder %s3232_s1, %s2604_s24  ;;  %p2608_p1 = scmp.lt.u32.totalorder %s2604_s24, %s3232_s1 }
   0x7   :  { %p2610_p2 = pnand %p2608_p1, %p2605_p0 }
   0x9   :  { %2613 = shalt.err (!%p2610_p2)
}
   0xa   :  { %s2614_s29 = scalar_lea.vmem %s31_s19, 3072  ;;  %p2619_p4 = scmp.lt.s32.totalorder %s31_s19, %s31_s19 }
   0xb   :  { %p2615_p3 = scmp.ne.s32.totalorder %s31_s19, %s2614_s29  ;;  %p2620_p5 = scmp.lt.s32.totalorder %s2614_s29, %s2614_s29 }
   0xd   :  { %p2621_p6 = por %p2620_p5, %p2619_p4 }
   0xf   :  { %p2622_p7 = pnand %p2621_p6, %p2615_p3 }
  0x11   :  { %2625 = shalt.err (!%p2622_p7)
}
  0x12   :  { %s2700_s30 = smov 64   ;;  %s2701_s6 = smov 4  }
  0x13   :  { %36 = dma.hbm_to_vmem [thread:$0]  %s3232_s1, 3072, %s31_s19, [#allocation6], %s2700_s30, %s2700_s30, %s2701_s6  }
  0x14   :  { %s2626_s11 = scalar_lea.hbm %s3231_s0, 128 }
  0x15   :  { %p2627_p8 = scmp.ne.s32.totalorder %s3231_s0, %s2626_s11  ;;  %p2630_p9 = scmp.lt.u32.totalorder %s2626_s11, %s3231_s0 }
  0x17   :  { %p2632_p10 = pnand %p2630_p9, %p2627_p8 }
  0x19   :  { %2635 = shalt.err (!%p2632_p10)
}
  0x1a   :  { %s2636_s16 = scalar_lea.vmem %s2739_s21, 128  ;;  %p2641_p12 = scmp.lt.s32.totalorder %s2739_s21, %s2739_s21 }
  0x1b   :  { %p2637_p11 = scmp.ne.s32.totalorder %s2739_s21, %s2636_s16  ;;  %p2642_p13 = scmp.lt.s32.totalorder %s2636_s16, %s2636_s16 }
  0x1d   :  { %p2643_p0 = por %p2642_p13, %p2641_p12 }
  0x1f   :  { %p2644_p1 = pnand %p2643_p0, %p2637_p11 }
  0x21   :  { %2647 = shalt.err (!%p2644_p1)
}
  0x22   :  { %24 = dma.hbm_to_vmem [thread:$0]  %s3231_s0, 128, %s2739_s21, [#allocation3], %s2700_s30, %s2700_s30, %s2701_s6  }
  0x23   :  { %s2702_s18 = smov [#allocation7]   ;;  %s2648_s23 = scalar_lea.hbm %s3233_s2, 2048 }
  0x24   :  { %s42_s19 = sshll.u32 %s2702_s18, 4  ;;  %p2649_p2 = scmp.ne.s32.totalorder %s3233_s2, %s2648_s23  ;;  %s43_s19 = int_to_ptr.vmem [resolvable:$true] %s42_s19 }
  0x25   :  { %p2652_p3 = scmp.lt.u32.totalorder %s2648_s23, %s3233_s2 }
  0x27   :  { %p2654_p4 = pnand %p2652_p3, %p2649_p2 }
  0x29   :  { %2657 = shalt.err (!%p2654_p4)
}
  0x2a   :  { %s2658_s28 = scalar_lea.vmem %s43_s19, 2048  ;;  %p2663_p6 = scmp.lt.s32.totalorder %s43_s19, %s43_s19 }
  0x2b   :  { %p2659_p5 = scmp.ne.s32.totalorder %s43_s19, %s2658_s28  ;;  %p2664_p7 = scmp.lt.s32.totalorder %s2658_s28, %s2658_s28 }
  0x2d   :  { %p2665_p8 = por %p2664_p7, %p2663_p6 }
  0x2f   :  { %p2666_p9 = pnand %p2665_p8, %p2659_p5 }
  0x31   :  { %2669 = shalt.err (!%p2666_p9)
}
  0x32   :  { %s2703_s0 = smov 128   ;;  %s2704_s21 = smov 8  }
  0x33   :  { %48 = dma.hbm_to_vmem [thread:$0]  %s3233_s2, 2048, %s43_s19, [#allocation6], %s2703_s0, %s2703_s0, %s2704_s21  }
  0x34   :  { %2692 = dma.done.wait [#allocation3], 128  }
  0x35   :  { %2693 = vsyncadd [#allocation3], 4294967168 }
  0x36   :  { %2694 = dma.done.wait [#allocation6], 5120  }
  0x37   :  { %2695 = vsyncadd [#allocation6], 4294962176  ;;  %v2705_v0 = vmov 0.0   ;;  %vm2706_vm0 = vmmov 0   ;;  %v2791_v1 = vld [vmem:[#allocation5] sm:$0xff]   ;;  %v2796_v3 = vld [vmem:[#allocation5 + $0x8] sm:$0xff]   ;;  %v133_v25 = vlaneseq }
  0x38   :  { %1962 = vmatprep.subr.bf16.mxu0 %v2705_v0  ;;  %1982 = vmatprep.subr.bf16.mxu1 %v2705_v0  ;;  %v2793_v2 = vld [vmem:[#allocation5 + $0x80] sm:$0xff]   ;;  %v2800_v4 = vld [vmem:[#allocation5 + $0x88] sm:$0xff]   ;;  %v2804_v5 = vld [vmem:[#allocation5 + $0x10] sm:$0xff]   ;;  %vm338_vm2 = vcmask 130048   ;;  %v2707_v34 = vmov 0.0|0.0  }
  0x39   :  { %1978 = vmatprep.mubr.msk.bf16.mxu0 %vm2706_vm0, %v2705_v0  ;;  %1998 = vmatprep.mubr.msk.bf16.mxu1 %vm2706_vm0, %v2705_v0  ;;  %v2808_v6 = vld [vmem:[#allocation5 + $0x90] sm:$0xff]   ;;  %v2812_v7 = vld [vmem:[#allocation5 + $0x18] sm:$0xff]   ;;  %v2820_v9 = vld [vmem:[#allocation5 + $0x20] sm:$0xff]   ;;  %v2884_v26 = vshrl.u32 %v133_v25, 7  ;;  %v137_v28 = vand.u32 127, %v133_v25 }
  0x3a   :  { %1963 = vmatpush3.bf16.msra.mxu0 %v2791_v1  ;;  %1983 = vmatpush3.bf16.msra.mxu1 %v2793_v2  ;;  %v2816_v8 = vld [vmem:[#allocation5 + $0x98] sm:$0xff]   ;;  %v2824_v10 = vld [vmem:[#allocation5 + $0xa0] sm:$0xff]   ;;  %v2828_v11 = vld [vmem:[#allocation5 + $0x28] sm:$0xff]  }
  0x3b   :  { %1964 = vmatprep.subr.bf16.mxu0 %v2705_v0  ;;  %1984 = vmatprep.subr.bf16.mxu1 %v2705_v0  ;;  %v2832_v12 = vld [vmem:[#allocation5 + $0xa8] sm:$0xff]   ;;  %v2835_v13 = vld [vmem:[#allocation5 + $0x30] sm:$0xff]   ;;  %v2844_v15 = vld [vmem:[#allocation5 + $0x38] sm:$0xff]   ;;  %v1711_v29 = vadd.s32 4294967295, %v2884_v26  ;;  %v135_v41 = vadd.s32 8, %v2884_v26  ;;  %v146_v44 = vadd.s32 1, %v2884_v26 }
  0x3c   :  { %v2838_v14 = vld [vmem:[#allocation5 + $0xb0] sm:$0xff]   ;;  %v2848_v16 = vld [vmem:[#allocation5 + $0xb8] sm:$0xff]   ;;  %v2853_v18 = vld [vmem:[#allocation5 + $0x40] sm:$0xff]  }
  0x3d   :  { %v2589_v17 = vld [vmem:[#allocation2] sm:$0xff]   ;;  %v2857_v19 = vld [vmem:[#allocation5 + $0x48] sm:$0xff]   ;;  %v2863_v20 = vld [vmem:[#allocation5 + $0x50] sm:$0xff]   ;;  %vm140_vm1 = vcmp.eq.s32.totalorder %v137_v28, %v1711_v29  ;;  %v1712_v42 = vadd.s32 4294967295, %v135_v41  ;;  %v147_v52 = vadd.s32 1, %v135_v41  ;;  %vm148_vm4 = vcmp.eq.s32.totalorder %v137_v28, %v146_v44 }
  0x3e   :  { %1965 = vmatpush3.bf16.msra.mxu0 %v2796_v3  ;;  %1985 = vmatpush3.bf16.msra.mxu1 %v2800_v4  ;;  %v2867_v21 = vld [vmem:[#allocation5 + $0x58] sm:$0xff]   ;;  %v2871_v22 = vld [vmem:[#allocation5 + $0x60] sm:$0xff]   ;;  %v2875_v23 = vld [vmem:[#allocation5 + $0x68] sm:$0xff]   ;;  %v2891_v30 = vsel %vm140_vm1, 1.0, %v2705_v0  ;;  %v2916_v56 = vsel %vm148_vm4, 1.0, %v2705_v0 }
  0x3f   :  { %1966 = vmatprep.subr.bf16.mxu0 %v2705_v0  ;;  %1986 = vmatprep.subr.bf16.mxu1 %v2705_v0  ;;  %v2880_v24 = vld [vmem:[#allocation5 + $0x70] sm:$0xff]   ;;  %v2886_v27 = vld [vmem:[#allocation5 + $0x78] sm:$0xff]   ;;  %v115_v31 = vld [vmem:[#allocation7] sm:$0xff]  ;;  %vm141_vm3 = vcmp.eq.s32.totalorder %v137_v28, %v1712_v42  ;;  %vm149_vm5 = vcmp.eq.s32.totalorder %v137_v28, %v147_v52 }
  0x40   :  { %v116_v32 = vld [vmem:[#allocation7 + $0x8] sm:$0xff]  ;;  %v117_v35 = vld [vmem:[#allocation7 + $0x10] sm:$0xff]  ;;  %v118_v36 = vld [vmem:[#allocation7 + $0x18] sm:$0xff]  ;;  %v2913_v55 = vsel %vm141_vm3, 1.0, %v2705_v0  ;;  %v2923_v57 = vsel %vm149_vm5, 1.0, %v2705_v0 }
  0x41   :  { %v2897_v33 = vpack.c.bf16 %v116_v32, %v115_v31  ;;  %v2902_v37 = vpack.c.bf16 %v118_v36, %v117_v35  ;;  %v119_v38 = vld [vmem:[#allocation7 + $0x20] sm:$0xff]  ;;  %v120_v39 = vld [vmem:[#allocation7 + $0x28] sm:$0xff]  ;;  %v121_v61 = vld [vmem:[#allocation7 + $0x30] sm:$0xff] }
  0x42   :  { %1967 = vmatpush3.bf16.msra.mxu0 %v2804_v5  ;;  %1987 = vmatpush3.bf16.msra.mxu1 %v2808_v6  ;;  %v2906_v40 = vpack.c.bf16 %v120_v39, %v119_v38  ;;  %v122_v62 = vld [vmem:[#allocation7 + $0x38] sm:$0xff]  ;;  %v123_v25 = vld [vmem:[#allocation7 + $0x40] sm:$0xff]  ;;  %v124_v28 = vld [vmem:[#allocation7 + $0x48] sm:$0xff] }
  0x43   :  { %1968 = vmatprep.subr.bf16.mxu0 %v2705_v0  ;;  %1988 = vmatprep.subr.bf16.mxu1 %v2705_v0  ;;  %v2942_v29 = vpack.c.bf16 %v124_v28, %v123_v25  ;;  %v125_v31 = vld [vmem:[#allocation7 + $0x50] sm:$0xff]  ;;  %v126_v32 = vld [vmem:[#allocation7 + $0x58] sm:$0xff]  ;;  %v127_v35 = vld [vmem:[#allocation7 + $0x60] sm:$0xff] }
  0x44   :  { %v2948_v36 = vpack.c.bf16 %v126_v32, %v125_v31  ;;  %v128_v38 = vld [vmem:[#allocation7 + $0x68] sm:$0xff]  ;;  %v129_v41 = vld [vmem:[#allocation7 + $0x70] sm:$0xff]  ;;  %v130_v42 = vld [vmem:[#allocation7 + $0x78] sm:$0xff] }
  0x45   :  { %v2952_v39 = vpack.c.bf16 %v128_v38, %v127_v35 }
  0x46   :  { %1969 = vmatpush3.bf16.msra.mxu0 %v2812_v7  ;;  %1989 = vmatpush3.bf16.msra.mxu1 %v2816_v8 }
  0x47   :  { %1970 = vmatprep.subr.bf16.mxu0 %v2705_v0  ;;  %1990 = vmatprep.subr.bf16.mxu1 %v2705_v0 }
  0x4a   :  { %1971 = vmatpush3.bf16.msra.mxu0 %v2820_v9  ;;  %1991 = vmatpush3.bf16.msra.mxu1 %v2824_v10 }
  0x4b   :  { %1972 = vmatprep.subr.bf16.mxu0 %v2705_v0  ;;  %1992 = vmatprep.subr.bf16.mxu1 %v2705_v0 }
  0x4e   :  { %1973 = vmatpush3.bf16.msra.mxu0 %v2828_v11  ;;  %1993 = vmatpush3.bf16.msra.mxu1 %v2832_v12 }
  0x4f   :  { %1974 = vmatprep.subr.bf16.mxu0 %v2705_v0  ;;  %1994 = vmatprep.subr.bf16.mxu1 %v2705_v0 }
  0x52   :  { %1975 = vmatpush3.bf16.msra.mxu0 %v2835_v13  ;;  %1995 = vmatpush3.bf16.msra.mxu1 %v2838_v14 }
  0x53   :  { %1976 = vmatprep.subr.bf16.mxu0 %v2705_v0  ;;  %1996 = vmatprep.subr.bf16.mxu1 %v2705_v0 }
  0x56   :  { %1977 = vmatpush3.bf16.msra.mxu0 %v2844_v15  ;;  %1997 = vmatpush3.bf16.msra.mxu1 %v2848_v16 }
  0x57   :  { %2009 = vmatprep.subr.bf16.mxu1 %v2705_v0 }
  0x59   :  { %1979 = vmatmul.mubr.bf16.vlgmr.msra.gmra.mrb[0].mxu0 %v2589_v17  ;;  %1999 = vmatmul.mubr.bf16.vlgmr.msra.gmra.mrb[0].mxu1 %v2589_v17 }
  0x5a   :  { %2010 = vmatpush3.bf16.msra.mxu1 %v2853_v18  ;;  %2025 = vmatprep.mubr.msk.bf16.mxu1 %vm2706_vm0, %v2705_v0 }
  0x5b   :  { %2011 = vmatprep.subr.bf16.mxu1 %v2705_v0  ;;  %2006 = vmatprep.mubr.msk.f32.mxu0 %vm338_vm2, %v2891_v30 }
  0x5e   :  { %2012 = vmatpush3.bf16.msra.mxu1 %v2857_v19 }
  0x5f   :  { %2013 = vmatprep.subr.bf16.mxu1 %v2705_v0 }
  0x62   :  { %2014 = vmatpush3.bf16.msra.mxu1 %v2863_v20 }
  0x63   :  { %2015 = vmatprep.subr.bf16.mxu1 %v2705_v0 }
  0x66   :  { %2016 = vmatpush3.bf16.msra.mxu1 %v2867_v21 }
  0x67   :  { %2017 = vmatprep.subr.bf16.mxu1 %v2705_v0 }
  0x6a   :  { %2018 = vmatpush3.bf16.msra.mxu1 %v2871_v22 }
  0x6b   :  { %2019 = vmatprep.subr.bf16.mxu1 %v2705_v0 }
  0x6e   :  { %2020 = vmatpush3.bf16.msra.mxu1 %v2875_v23 }
  0x6f   :  { %2021 = vmatprep.subr.bf16.mxu1 %v2705_v0 }
  0x72   :  { %2022 = vmatpush3.bf16.msra.mxu1 %v2880_v24 }
  0x73   :  { %2023 = vmatprep.subr.bf16.mxu1 %v2705_v0 }
  0x76   :  { %2024 = vmatpush3.bf16.msra.mxu1 %v2886_v27 }
  0x77   :  { %2426 = vmatprep.subr.bf16.mxu1 %v2707_v34 }
  0x79   :  { %2026 = vmatmul.mubr.bf16.vlgmr.msra.gmra.mrb[4].mxu1 %v2589_v17  ;;  %v2936_v17 = vpack.c.bf16 %v122_v62, %v121_v61 }
  0x7a   :  { %2103 = vmatprep.mubr.msk.f32.mxu1 %vm2706_vm0, %v2705_v0  ;;  %2428 = vmatpush3.bf16.msra.mxu1 %v2897_v33 }
  0x7b   :  { %2429 = vmatprep.subr.bf16.mxu1 %v2707_v34 }
  0x7e   :  { %2431 = vmatpush3.bf16.msra.mxu1 %v2902_v37 }
  0x7f   :  { %2432 = vmatprep.subr.bf16.mxu1 %v2707_v34 }
  0x82   :  { %2434 = vmatpush3.bf16.msra.mxu1 %v2906_v40 }
  0x83   :  { %2435 = vmatprep.subr.bf16.mxu1 %v2707_v34 }
  0x86   :  { %2437 = vmatpush3.bf16.msra.mxu1 %v2936_v17 }
  0x87   :  { %2438 = vmatprep.subr.bf16.mxu1 %v2707_v34 }
  0x8a   :  { %2440 = vmatpush3.bf16.msra.mxu1 %v2942_v29 }
  0x8b   :  { %2441 = vmatprep.subr.bf16.mxu1 %v2707_v34 }
  0x8e   :  { %2443 = vmatpush3.bf16.msra.mxu1 %v2948_v36 }
  0x8f   :  { %2444 = vmatprep.subr.bf16.mxu1 %v2707_v34 }
  0x92   :  { %2446 = vmatpush3.bf16.msra.mxu1 %v2952_v39 }
  0x93   :  { %2447 = vmatprep.subr.bf16.mxu1 %v2707_v34 }
 0x12c   :  { %v242_v43 = vpop.f32.mrb[0].mxu0  ;;  %v331_v46 = vpop.f32.mrb[0].mxu1 }
 0x12d   :  { %v1980_v45 = vpop.f32.mrb[1].mxu0  ;;  %v2000_v48 = vpop.f32.mrb[1].mxu1 }
 0x12e   :  { %v245_v47 = vpop.f32.mrb[2].mxu0  ;;  %v334_v51 = vpop.f32.mrb[2].mxu1 }
 0x12f   :  { %v2394_v49 = vpack.c.bf16 %v245_v47, %v242_v43  ;;  %v1981_v50 = vpop.f32.mrb[3].mxu0  ;;  %v2398_v53 = vpack.c.bf16 %v334_v51, %v331_v46  ;;  %v2001_v54 = vpop.f32.mrb[3].mxu1  ;;  %v2958_v43 = vpack.c.bf16 %v130_v42, %v129_v41 }
 0x131   :  { %2395 = vmatprep.subr.bf16.mxu0 %v2394_v49  ;;  %2449 = vmatpush3.bf16.msra.mxu1 %v2958_v43 }
 0x132   :  { %2397 = vmatpush3.bf16.msra.mxu0 %v2394_v49  ;;  %2126 = vmatprep.subr.bf16.mxu1 %v2705_v0 }
 0x133   :  { %2399 = vmatprep.subr.bf16.mxu0 %v2398_v53 }
 0x135   :  { %2007 = vmatmul.mubr.msk.f32.vlgmr.msra.gmra.mrb[4].mxu0 %vm338_vm2, %v2913_v55 }
 0x136   :  { %2401 = vmatpush3.bf16.msra.mxu0 %v2398_v53  ;;  %2033 = vmatprep.mubr.msk.f32.mxu0 %vm338_vm2, %v2916_v56 }
 0x137   :  { %2402 = vmatprep.subr.bf16.mxu0 %v2707_v34 }
 0x139   :  { %2034 = vmatmul.mubr.msk.f32.vlgmr.msra.gmra.mrb[6].mxu0 %vm338_vm2, %v2923_v57 }
 0x13a   :  { %2404 = vmatpush3.bf16.msra.mxu0 %v2897_v33  ;;  %2068 = vmatprep.mubr.msk.f32.mxu0 %vm2706_vm0, %v2705_v0 }
 0x13b   :  { %2405 = vmatprep.subr.bf16.mxu0 %v2707_v34 }
 0x13e   :  { %2407 = vmatpush3.bf16.msra.mxu0 %v2902_v37 }
 0x13f   :  { %2408 = vmatprep.subr.bf16.mxu0 %v2707_v34 }
 0x142   :  { %2410 = vmatpush3.bf16.msra.mxu0 %v2906_v40 }
 0x143   :  { %2411 = vmatprep.subr.bf16.mxu0 %v2707_v34 }
 0x146   :  { %2413 = vmatpush3.bf16.msra.mxu0 %v2936_v17 }
 0x147   :  { %2414 = vmatprep.subr.bf16.mxu0 %v2707_v34 }
 0x14a   :  { %2416 = vmatpush3.bf16.msra.mxu0 %v2942_v29 }
 0x14b   :  { %2417 = vmatprep.subr.bf16.mxu0 %v2707_v34 }
 0x14c   :  { %v502_v58 = vpop.f32.mrb[4].mxu1 }
 0x14d   :  { %v2027_v59 = vpop.f32.mrb[5].mxu1 }
 0x14e   :  { %v505_v60 = vpop.f32.mrb[6].mxu1  ;;  %2419 = vmatpush3.bf16.msra.mxu0 %v2948_v36 }
 0x14f   :  { %v2028_v63 = vpop.f32.mrb[7].mxu1  ;;  %2420 = vmatprep.subr.bf16.mxu0 %v2707_v34 }
 0x152   :  { %2422 = vmatpush3.bf16.msra.mxu0 %v2952_v39 }
 0x153   :  { %2423 = vmatprep.subr.bf16.mxu0 %v2707_v34 }
 0x156   :  { %2425 = vmatpush3.bf16.msra.mxu0 %v2958_v43 }
 0x157   :  { %2106 = vmatprep.subr.bf16.mxu0 %v2705_v0 }
 0x208   :  { %v2008_v44 = vpop.f32.mrb[4].mxu0 }
 0x209   :  { %v411_v45 = vpop.f32.mrb[5].mxu0  ;;  %v506_v46 = vadd.f32 %v2008_v44, %v505_v60 }
 0x20a   :  { %v503_v47 = vadd.f32 %v502_v58, %v411_v45 }
 0x20c   :  { %v2035_v48 = vpop.f32.mrb[6].mxu0 }
 0x20d   :  { %v2966_v49 = vadd.f32 %v2035_v48, %v506_v46  ;;  %v581_v50 = vpop.f32.mrb[7].mxu0 }
 0x20e   :  { %v2968_v51 = vadd.f32 %v581_v50, %v503_v47 }
 0x20f   :  { %v600_v52 = vmul.f32 %v2966_v49, %v2966_v49 }
 0x210   :  { %v592_v53 = vadd.f32 %v2966_v49, %v2968_v51  ;;  %v599_v54 = vmul.f32 %v2968_v51, %v2968_v51 }
 0x212   :  { %v593_v59 = vrot.slane %v592_v53, 4  ;;  %v601_v61 = vadd.f32 %v600_v52, %v599_v54  ;;  %v3012_v54 = vsub.s32 0, %v2884_v26  ;;  %v3027_v26 = vld [vmem:[%s3235_s4] ss:$0 sm:$0xff] }
 0x214   :  { %v594_v62 = vadd.f32 %v593_v59, %v592_v53  ;;  %v602_v60 = vrot.slane %v601_v61, 4  ;;  %v3017_v59 = vld [vmem:[%s3234_s3] sm:$0x1]  ;;  %s2708_s3 = smov [#allocation8]  }
 0x215   :  { %s1698_s4 = sshll.u32 %s2708_s3, 4  ;;  %s1699_s4 = int_to_ptr.vmem [resolvable:$true] %s1698_s4 }
 0x216   :  { %v595_v58 = vrot.slane %v594_v62, 2  ;;  %v603_v63 = vadd.f32 %v602_v60, %v601_v61  ;;  %s2670_s9 = scalar_lea.vmem %s1699_s4, 256  ;;  %p2675_p11 = scmp.lt.s32.totalorder %s1699_s4, %s1699_s4 }
 0x217   :  { %p2671_p10 = scmp.ne.s32.totalorder %s1699_s4, %s2670_s9  ;;  %p2676_p12 = scmp.lt.s32.totalorder %s2670_s9, %s2670_s9 }
 0x218   :  { %v596_v25 = vadd.f32 %v595_v58, %v594_v62  ;;  %v604_v28 = vrot.slane %v603_v63, 2 }
 0x219   :  { %p2677_p13 = por %p2676_p12, %p2675_p11 }
 0x21a   :  { %v597_v31 = vrot.slane %v596_v25, 1  ;;  %v605_v32 = vadd.f32 %v604_v28, %v603_v63 }
 0x21b   :  { %p2678_p0 = pnand %p2677_p13, %p2671_p10 }
 0x21c   :  { %v598_v35 = vadd.f32 %v597_v31, %v596_v25  ;;  %v606_v38 = vrot.slane %v605_v32, 1 }
 0x21e   :  { %2069 = vmatmul.mubr.f32.vlgmr.msra.gmra.mrb[8].mxu0 %v598_v35  ;;  %v607_v41 = vadd.f32 %v606_v38, %v605_v32 }
 0x21f   :  { %2107 = vmatpush3.bf16.msra.mxu0 %v2791_v1  ;;  %2122 = vmatprep.mubr.msk.bf16.mxu0 %vm2706_vm0, %v2705_v0 }
 0x220   :  { %2104 = vmatmul.mubr.f32.vlgmr.msra.gmra.mrb[8].mxu1 %v607_v41  ;;  %2108 = vmatprep.subr.bf16.mxu0 %v2705_v0 }
 0x221   :  { %2127 = vmatpush3.bf16.msra.mxu1 %v2793_v2  ;;  %2142 = vmatprep.mubr.msk.bf16.mxu1 %vm2706_vm0, %v2705_v0 }
 0x222   :  { %2128 = vmatprep.subr.bf16.mxu1 %v2705_v0 }
 0x223   :  { %2109 = vmatpush3.bf16.msra.mxu0 %v2796_v3 }
 0x224   :  { %2110 = vmatprep.subr.bf16.mxu0 %v2705_v0 }
 0x225   :  { %2129 = vmatpush3.bf16.msra.mxu1 %v2800_v4 }
 0x226   :  { %2130 = vmatprep.subr.bf16.mxu1 %v2705_v0 }
 0x227   :  { %2111 = vmatpush3.bf16.msra.mxu0 %v2804_v5 }
 0x228   :  { %2112 = vmatprep.subr.bf16.mxu0 %v2705_v0 }
 0x229   :  { %2131 = vmatpush3.bf16.msra.mxu1 %v2808_v6 }
 0x22a   :  { %2132 = vmatprep.subr.bf16.mxu1 %v2705_v0 }
 0x22b   :  { %2113 = vmatpush3.bf16.msra.mxu0 %v2812_v7 }
 0x22c   :  { %2114 = vmatprep.subr.bf16.mxu0 %v2705_v0 }
 0x22d   :  { %2133 = vmatpush3.bf16.msra.mxu1 %v2816_v8 }
 0x22e   :  { %2134 = vmatprep.subr.bf16.mxu1 %v2705_v0 }
 0x22f   :  { %2115 = vmatpush3.bf16.msra.mxu0 %v2820_v9 }
 0x230   :  { %2116 = vmatprep.subr.bf16.mxu0 %v2705_v0 }
 0x231   :  { %2135 = vmatpush3.bf16.msra.mxu1 %v2824_v10 }
 0x232   :  { %2136 = vmatprep.subr.bf16.mxu1 %v2705_v0 }
 0x233   :  { %2117 = vmatpush3.bf16.msra.mxu0 %v2828_v11 }
 0x234   :  { %2118 = vmatprep.subr.bf16.mxu0 %v2705_v0 }
 0x235   :  { %2137 = vmatpush3.bf16.msra.mxu1 %v2832_v12 }
 0x236   :  { %2138 = vmatprep.subr.bf16.mxu1 %v2705_v0 }
 0x237   :  { %2119 = vmatpush3.bf16.msra.mxu0 %v2835_v13 }
 0x238   :  { %2120 = vmatprep.subr.bf16.mxu0 %v2705_v0 }
 0x239   :  { %2139 = vmatpush3.bf16.msra.mxu1 %v2838_v14 }
 0x23a   :  { %2140 = vmatprep.subr.bf16.mxu1 %v2705_v0 }
 0x23b   :  { %2121 = vmatpush3.bf16.msra.mxu0 %v2844_v15 }
 0x23d   :  { %2141 = vmatpush3.bf16.msra.mxu1 %v2848_v16 }
 0x23e   :  { %2458 = vmatprep.subr.bf16.mxu1 %v2707_v34 }
 0x2f1   :  { %v674_v42 = vpop.f32.mrb[8].mxu0 }
 0x2f2   :  { %v678_v44 = vmul.f32 0.001953125, %v674_v42  ;;  %v2070_v45 = vpop.f32.mrb[9].mxu0 }
 0x2f3   :  { %v745_v46 = vpop.f32.mrb[8].mxu1 }
 0x2f4   :  { %v750_v47 = vmul.f32 %v678_v44, %v678_v44  ;;  %v749_v48 = vmul.f32 0.001953125, %v745_v46  ;;  %v2105_v50 = vpop.f32.mrb[9].mxu1  ;;  %v758_v61 = vrot.slane %v678_v44, %v3012_v54 }
 0x2f6   :  { %v751_v52 = vsub.f32 %v749_v48, %v750_v47  ;;  %v759_v58 = vsub.f32 %v2968_v51, %v758_v61  ;;  %v760_v63 = vsub.f32 %v2966_v49, %v758_v61 }
 0x2f8   :  { %v752_v53 = vadd.f32 1e-05, %v751_v52 }
 0x2fa   :  { %2598 = vrsqrt.f32 %v752_v53 }
 0x304   :  { %v2599_v62 = vpop.eup %2598 }
 0x305   :  { %v754_v60 = vmul.f32 %v2599_v62, %v3017_v59 }
 0x307   :  { %v764_v25 = vrot.slane %v754_v60, %v3012_v54 }
 0x309   :  { %v765_v28 = vmul.f32 %v764_v25, %v759_v58  ;;  %v766_v31 = vmul.f32 %v764_v25, %v760_v63 }
 0x30b   :  { %v773_v32 = vadd.f32 %v3027_v26, %v765_v28  ;;  %v774_v35 = vadd.f32 %v3027_v26, %v766_v31 }
 0x30d   :  { %v775_v38 = vmax.f32 %v773_v32, 0.0  ;;  %v776_v41 = vmax.f32 %v774_v35, 0.0 }
 0x30f   :  { %v777_v42 = vpack.c.bf16 %v776_v41, %v775_v38 }
 0x311   :  { %2123 = vmatmul.mubr.bf16.vlgmr.msra.gmra.mrb[12].mxu0 %v777_v42  ;;  %2143 = vmatmul.mubr.bf16.vlgmr.msra.gmra.mrb[12].mxu1 %v777_v42 }
 0x312   :  { %2150 = vmatprep.mubr.msk.f32.mxu0 %vm338_vm2, %v2891_v30  ;;  %2460 = vmatpush3.bf16.msra.mxu1 %v2897_v33 }
 0x313   :  { %2461 = vmatprep.subr.bf16.mxu1 %v2707_v34  ;;  %2212 = vmatprep.mubr.msk.f32.mxu1 %vm2706_vm0, %v2705_v0 }
 0x316   :  { %2463 = vmatpush3.bf16.msra.mxu1 %v2902_v37 }
 0x317   :  { %2464 = vmatprep.subr.bf16.mxu1 %v2707_v34 }
 0x31a   :  { %2466 = vmatpush3.bf16.msra.mxu1 %v2906_v40 }
 0x31b   :  { %2467 = vmatprep.subr.bf16.mxu1 %v2707_v34 }
 0x31e   :  { %2469 = vmatpush3.bf16.msra.mxu1 %v2936_v17 }
 0x31f   :  { %2470 = vmatprep.subr.bf16.mxu1 %v2707_v34 }
 0x322   :  { %2472 = vmatpush3.bf16.msra.mxu1 %v2942_v29 }
 0x323   :  { %2473 = vmatprep.subr.bf16.mxu1 %v2707_v34 }
 0x326   :  { %2475 = vmatpush3.bf16.msra.mxu1 %v2948_v36 }
 0x327   :  { %2476 = vmatprep.subr.bf16.mxu1 %v2707_v34 }
 0x32a   :  { %2478 = vmatpush3.bf16.msra.mxu1 %v2952_v39 }
 0x32b   :  { %2479 = vmatprep.subr.bf16.mxu1 %v2707_v34 }
 0x32e   :  { %2481 = vmatpush3.bf16.msra.mxu1 %v2958_v43 }
 0x32f   :  { %2250 = vmatprep.subr.bf16.mxu1 %v2705_v0 }
 0x3e4   :  { %v812_v44 = vpop.f32.mrb[12].mxu0  ;;  %v853_v45 = vpop.f32.mrb[12].mxu1 }
 0x3e5   :  { %v2124_v46 = vpop.f32.mrb[13].mxu0  ;;  %v2144_v47 = vpop.f32.mrb[13].mxu1 }
 0x3e6   :  { %v815_v48 = vpop.f32.mrb[14].mxu0  ;;  %v856_v50 = vpop.f32.mrb[14].mxu1 }
 0x3e7   :  { %v2450_v52 = vpack.c.bf16 %v815_v48, %v812_v44  ;;  %v2454_v53 = vpack.c.bf16 %v856_v50, %v853_v45  ;;  %v2125_v61 = vpop.f32.mrb[15].mxu0  ;;  %v2145_v62 = vpop.f32.mrb[15].mxu1 }
 0x3e9   :  { %2451 = vmatprep.subr.bf16.mxu0 %v2450_v52 }
 0x3ea   :  { %2453 = vmatpush3.bf16.msra.mxu0 %v2450_v52 }
 0x3eb   :  { %2153 = vmatprep.subr.bf16.mxu0 %v2705_v0 }
 0x3ed   :  { %2151 = vmatmul.mubr.msk.f32.vlgmr.msra.gmra.mrb[10].mxu0 %vm338_vm2, %v2913_v55 }
 0x3ee   :  { %2154 = vmatpush3.bf16.msra.mxu0 %v2853_v18  ;;  %2169 = vmatprep.mubr.msk.bf16.mxu0 %vm2706_vm0, %v2705_v0 }
 0x3ef   :  { %2155 = vmatprep.subr.bf16.mxu0 %v2705_v0 }
 0x3f2   :  { %2156 = vmatpush3.bf16.msra.mxu0 %v2857_v19 }
 0x3f3   :  { %2157 = vmatprep.subr.bf16.mxu0 %v2705_v0 }
 0x3f6   :  { %2158 = vmatpush3.bf16.msra.mxu0 %v2863_v20 }
 0x3f7   :  { %2159 = vmatprep.subr.bf16.mxu0 %v2705_v0 }
 0x3fa   :  { %2160 = vmatpush3.bf16.msra.mxu0 %v2867_v21 }
 0x3fb   :  { %2161 = vmatprep.subr.bf16.mxu0 %v2705_v0 }
 0x3fe   :  { %2162 = vmatpush3.bf16.msra.mxu0 %v2871_v22 }
 0x3ff   :  { %2163 = vmatprep.subr.bf16.mxu0 %v2705_v0 }
 0x402   :  { %2164 = vmatpush3.bf16.msra.mxu0 %v2875_v23 }
 0x403   :  { %2165 = vmatprep.subr.bf16.mxu0 %v2705_v0 }
 0x406   :  { %2166 = vmatpush3.bf16.msra.mxu0 %v2880_v24 }
 0x407   :  { %2167 = vmatprep.subr.bf16.mxu0 %v2705_v0 }
 0x40a   :  { %2168 = vmatpush3.bf16.msra.mxu0 %v2886_v27 }
 0x40b   :  { %2455 = vmatprep.subr.bf16.mxu0 %v2454_v53 }
 0x40d   :  { %2170 = vmatmul.mubr.bf16.vlgmr.msra.gmra.mrb[16].mxu0 %v777_v42 }
 0x40e   :  { %2457 = vmatpush3.bf16.msra.mxu0 %v2454_v53  ;;  %2177 = vmatprep.mubr.msk.f32.mxu0 %vm338_vm2, %v2916_v56 }
 0x40f   :  { %2482 = vmatprep.subr.bf16.mxu0 %v2707_v34 }
 0x415   :  { %2178 = vmatmul.mubr.msk.f32.vlgmr.msra.gmra.mrb[20].mxu0 %vm338_vm2, %v2923_v57 }
 0x416   :  { %2484 = vmatpush3.bf16.msra.mxu0 %v2897_v33  ;;  %2247 = vmatprep.mubr.msk.f32.mxu0 %vm2706_vm0, %v2705_v0 }
 0x417   :  { %2485 = vmatprep.subr.bf16.mxu0 %v2707_v34 }
 0x41a   :  { %2487 = vmatpush3.bf16.msra.mxu0 %v2902_v37 }
 0x41b   :  { %2488 = vmatprep.subr.bf16.mxu0 %v2707_v34 }
 0x41e   :  { %2490 = vmatpush3.bf16.msra.mxu0 %v2906_v40 }
 0x41f   :  { %2491 = vmatprep.subr.bf16.mxu0 %v2707_v34 }
 0x422   :  { %2493 = vmatpush3.bf16.msra.mxu0 %v2936_v17 }
 0x423   :  { %2494 = vmatprep.subr.bf16.mxu0 %v2707_v34 }
 0x426   :  { %2496 = vmatpush3.bf16.msra.mxu0 %v2942_v29 }
 0x427   :  { %2497 = vmatprep.subr.bf16.mxu0 %v2707_v34 }
 0x42a   :  { %2499 = vmatpush3.bf16.msra.mxu0 %v2948_v36 }
 0x42b   :  { %2500 = vmatprep.subr.bf16.mxu0 %v2707_v34 }
 0x42e   :  { %2502 = vmatpush3.bf16.msra.mxu0 %v2952_v39 }
 0x42f   :  { %2503 = vmatprep.subr.bf16.mxu0 %v2707_v34 }
 0x432   :  { %2505 = vmatpush3.bf16.msra.mxu0 %v2958_v43 }
 0x433   :  { %2270 = vmatprep.subr.bf16.mxu0 %v2705_v0 }
 0x4c0   :  { %v2152_v60 = vpop.f32.mrb[10].mxu0 }
 0x4c1   :  { %v926_v58 = vpop.f32.mrb[11].mxu0 }
 0x4e0   :  { %v969_v63 = vpop.f32.mrb[16].mxu0 }
 0x4e1   :  { %v970_v25 = vadd.f32 %v969_v63, %v926_v58  ;;  %v2171_v28 = vpop.f32.mrb[17].mxu0 }
 0x4e2   :  { %v972_v31 = vpop.f32.mrb[18].mxu0 }
 0x4e3   :  { %v973_v32 = vadd.f32 %v2152_v60, %v972_v31  ;;  %v2172_v35 = vpop.f32.mrb[19].mxu0 }
 0x4e8   :  { %v2179_v38 = vpop.f32.mrb[20].mxu0 }
 0x4e9   :  { %v1052_v41 = vadd.f32 %v2179_v38, %v973_v32  ;;  %v1042_v42 = vpop.f32.mrb[21].mxu0 }
 0x4ea   :  { %v1051_v44 = vadd.f32 %v1042_v42, %v970_v25 }
 0x4eb   :  { %v3095_v45 = vadd.f32 %v1052_v41, %v2966_v49 }
 0x4ec   :  { %v3098_v46 = vadd.f32 %v1051_v44, %v2968_v51 }
 0x4ed   :  { %v1063_v47 = vmul.f32 %v3095_v45, %v3095_v45 }
 0x4ee   :  { %v1055_v48 = vadd.f32 %v3095_v45, %v3098_v46  ;;  %v1062_v50 = vmul.f32 %v3098_v46, %v3098_v46 }
 0x4f0   :  { %v1056_v52 = vrot.slane %v1055_v48, 4  ;;  %v1064_v53 = vadd.f32 %v1063_v47, %v1062_v50 }
 0x4f2   :  { %v1057_v61 = vadd.f32 %v1056_v52, %v1055_v48  ;;  %v1065_v62 = vrot.slane %v1064_v53, 4 }
 0x4f4   :  { %v1058_v60 = vrot.slane %v1057_v61, 2  ;;  %v1066_v58 = vadd.f32 %v1065_v62, %v1064_v53 }
 0x4f6   :  { %v1059_v63 = vadd.f32 %v1058_v60, %v1057_v61  ;;  %v1067_v25 = vrot.slane %v1066_v58, 2 }
 0x4f8   :  { %v1060_v28 = vrot.slane %v1059_v63, 1  ;;  %v1068_v31 = vadd.f32 %v1067_v25, %v1066_v58 }
 0x4fa   :  { %v1061_v32 = vadd.f32 %v1060_v28, %v1059_v63  ;;  %v1069_v35 = vrot.slane %v1068_v31, 1 }
 0x4fc   :  { %2213 = vmatmul.mubr.f32.vlgmr.msra.gmra.mrb[10].mxu1 %v1061_v32  ;;  %v1070_v38 = vadd.f32 %v1069_v35, %v1068_v31 }
 0x4fd   :  { %2251 = vmatpush3.bf16.msra.mxu1 %v2791_v1  ;;  %2266 = vmatprep.mubr.msk.bf16.mxu1 %vm2706_vm0, %v2705_v0 }
 0x4fe   :  { %2248 = vmatmul.mubr.f32.vlgmr.msra.gmra.mrb[22].mxu0 %v1070_v38  ;;  %2252 = vmatprep.subr.bf16.mxu1 %v2705_v0 }
 0x4ff   :  { %2271 = vmatpush3.bf16.msra.mxu0 %v2793_v2  ;;  %2286 = vmatprep.mubr.msk.bf16.mxu0 %vm2706_vm0, %v2705_v0 }
 0x500   :  { %2272 = vmatprep.subr.bf16.mxu0 %v2705_v0 }
 0x501   :  { %2253 = vmatpush3.bf16.msra.mxu1 %v2796_v3 }
 0x502   :  { %2254 = vmatprep.subr.bf16.mxu1 %v2705_v0 }
 0x503   :  { %2273 = vmatpush3.bf16.msra.mxu0 %v2800_v4 }
 0x504   :  { %2274 = vmatprep.subr.bf16.mxu0 %v2705_v0 }
 0x505   :  { %2255 = vmatpush3.bf16.msra.mxu1 %v2804_v5 }
 0x506   :  { %2256 = vmatprep.subr.bf16.mxu1 %v2705_v0 }
 0x507   :  { %2275 = vmatpush3.bf16.msra.mxu0 %v2808_v6 }
 0x508   :  { %2276 = vmatprep.subr.bf16.mxu0 %v2705_v0 }
 0x509   :  { %2257 = vmatpush3.bf16.msra.mxu1 %v2812_v7 }
 0x50a   :  { %2258 = vmatprep.subr.bf16.mxu1 %v2705_v0 }
 0x50b   :  { %2277 = vmatpush3.bf16.msra.mxu0 %v2816_v8 }
 0x50c   :  { %2278 = vmatprep.subr.bf16.mxu0 %v2705_v0 }
 0x50d   :  { %2259 = vmatpush3.bf16.msra.mxu1 %v2820_v9 }
 0x50e   :  { %2260 = vmatprep.subr.bf16.mxu1 %v2705_v0 }
 0x50f   :  { %2279 = vmatpush3.bf16.msra.mxu0 %v2824_v10 }
 0x510   :  { %2280 = vmatprep.subr.bf16.mxu0 %v2705_v0 }
 0x511   :  { %2261 = vmatpush3.bf16.msra.mxu1 %v2828_v11 }
 0x512   :  { %2262 = vmatprep.subr.bf16.mxu1 %v2705_v0 }
 0x513   :  { %2281 = vmatpush3.bf16.msra.mxu0 %v2832_v12 }
 0x514   :  { %2282 = vmatprep.subr.bf16.mxu0 %v2705_v0 }
 0x515   :  { %2263 = vmatpush3.bf16.msra.mxu1 %v2835_v13 }
 0x516   :  { %2264 = vmatprep.subr.bf16.mxu1 %v2705_v0 }
 0x517   :  { %2283 = vmatpush3.bf16.msra.mxu0 %v2838_v14 }
 0x518   :  { %2284 = vmatprep.subr.bf16.mxu0 %v2705_v0 }
 0x519   :  { %2265 = vmatpush3.bf16.msra.mxu1 %v2844_v15 }
 0x51b   :  { %2285 = vmatpush3.bf16.msra.mxu0 %v2848_v16 }
 0x5cf   :  { %v1137_v1 = vpop.f32.mrb[10].mxu1 }
 0x5d0   :  { %v1141_v2 = vmul.f32 0.001953125, %v1137_v1  ;;  %v2214_v3 = vpop.f32.mrb[11].mxu1 }
 0x5d1   :  { %v1208_v4 = vpop.f32.mrb[22].mxu0 }
 0x5d2   :  { %v1213_v5 = vmul.f32 %v1141_v2, %v1141_v2  ;;  %v1212_v6 = vmul.f32 0.001953125, %v1208_v4  ;;  %v2249_v7 = vpop.f32.mrb[23].mxu0  ;;  %v1221_v10 = vrot.slane %v1141_v2, %v3012_v54 }
 0x5d4   :  { %v1214_v8 = vsub.f32 %v1212_v6, %v1213_v5  ;;  %v1222_v13 = vsub.f32 %v3098_v46, %v1221_v10  ;;  %v1223_v14 = vsub.f32 %v3095_v45, %v1221_v10 }
 0x5d6   :  { %v1215_v9 = vadd.f32 1e-05, %v1214_v8 }
 0x5d8   :  { %2600 = vrsqrt.f32 %v1215_v9 }
 0x5e2   :  { %v2601_v11 = vpop.eup %2600 }
 0x5e3   :  { %v1217_v12 = vmul.f32 %v2601_v11, %v3017_v59 }
 0x5e5   :  { %v1227_v15 = vrot.slane %v1217_v12, %v3012_v54 }
 0x5e7   :  { %v1228_v16 = vmul.f32 %v1227_v15, %v1222_v13  ;;  %v1229_v41 = vmul.f32 %v1227_v15, %v1223_v14 }
 0x5e9   :  { %v1230_v42 = vadd.f32 %v3027_v26, %v1228_v16  ;;  %v1231_v44 = vadd.f32 %v3027_v26, %v1229_v41 }
 0x5eb   :  { %v1232_v47 = vmax.f32 %v1230_v42, 0.0  ;;  %v1233_v48 = vmax.f32 %v1231_v44, 0.0 }
 0x5ed   :  { %v1234_v50 = vpack.c.bf16 %v1233_v48, %v1232_v47 }
 0x5ef   :  { %2267 = vmatmul.mubr.bf16.vlgmr.msra.gmra.mrb[16].mxu1 %v1234_v50  ;;  %2287 = vmatmul.mubr.bf16.vlgmr.msra.gmra.mrb[24].mxu0 %v1234_v50 }
 0x5f0   :  { %2294 = vmatprep.mubr.msk.f32.mxu1 %vm338_vm2, %v2891_v30  ;;  %2321 = vmatprep.mubr.msk.f32.mxu0 %vm338_vm2, %v2916_v56 }
 0x6c2   :  { %v1269_v45 = vpop.f32.mrb[16].mxu1  ;;  %v1310_v46 = vpop.f32.mrb[24].mxu0 }
 0x6c3   :  { %v2268_v52 = vpop.f32.mrb[17].mxu1  ;;  %v2288_v53 = vpop.f32.mrb[25].mxu0 }
 0x6c4   :  { %v1272_v61 = vpop.f32.mrb[18].mxu1  ;;  %v1313_v62 = vpop.f32.mrb[26].mxu0 }
 0x6c5   :  { %v2506_v60 = vpack.c.bf16 %v1272_v61, %v1269_v45  ;;  %v2510_v58 = vpack.c.bf16 %v1313_v62, %v1310_v46  ;;  %v2269_v63 = vpop.f32.mrb[19].mxu1  ;;  %v2289_v25 = vpop.f32.mrb[27].mxu0 }
 0x6c7   :  { %2507 = vmatprep.subr.bf16.mxu1 %v2506_v60  ;;  %2511 = vmatprep.subr.bf16.mxu0 %v2510_v58 }
 0x6c8   :  { %2509 = vmatpush3.bf16.msra.mxu1 %v2506_v60  ;;  %2513 = vmatpush3.bf16.msra.mxu0 %v2510_v58 }
 0x6c9   :  { %2297 = vmatprep.subr.bf16.mxu1 %v2705_v0  ;;  %2514 = vmatprep.subr.bf16.mxu0 %v2707_v34 }
 0x6cb   :  { %2295 = vmatmul.mubr.msk.f32.vlgmr.msra.gmra.mrb[20].mxu1 %vm338_vm2, %v2913_v55  ;;  %2322 = vmatmul.mubr.msk.f32.vlgmr.msra.gmra.mrb[28].mxu0 %vm338_vm2, %v2923_v57 }
 0x6cc   :  { %2298 = vmatpush3.bf16.msra.mxu1 %v2853_v18  ;;  %2313 = vmatprep.mubr.msk.bf16.mxu1 %vm2706_vm0, %v2705_v0 }
 0x6cd   :  { %2299 = vmatprep.subr.bf16.mxu1 %v2705_v0  ;;  %2516 = vmatpush3.bf16.msra.mxu0 %v2897_v33 }
 0x6ce   :  { %2517 = vmatprep.subr.bf16.mxu0 %v2707_v34  ;;  %2356 = vmatprep.mubr.msk.f32.mxu0 %vm2706_vm0, %v2705_v0 }
 0x6d0   :  { %2300 = vmatpush3.bf16.msra.mxu1 %v2857_v19 }
 0x6d1   :  { %2301 = vmatprep.subr.bf16.mxu1 %v2705_v0  ;;  %2519 = vmatpush3.bf16.msra.mxu0 %v2902_v37 }
 0x6d2   :  { %2520 = vmatprep.subr.bf16.mxu0 %v2707_v34 }
 0x6d4   :  { %2302 = vmatpush3.bf16.msra.mxu1 %v2863_v20 }
 0x6d5   :  { %2303 = vmatprep.subr.bf16.mxu1 %v2705_v0  ;;  %2522 = vmatpush3.bf16.msra.mxu0 %v2906_v40 }
 0x6d6   :  { %2523 = vmatprep.subr.bf16.mxu0 %v2707_v34 }
 0x6d8   :  { %2304 = vmatpush3.bf16.msra.mxu1 %v2867_v21 }
 0x6d9   :  { %2305 = vmatprep.subr.bf16.mxu1 %v2705_v0  ;;  %2525 = vmatpush3.bf16.msra.mxu0 %v2936_v17 }
 0x6da   :  { %2526 = vmatprep.subr.bf16.mxu0 %v2707_v34 }
 0x6dc   :  { %2306 = vmatpush3.bf16.msra.mxu1 %v2871_v22 }
 0x6dd   :  { %2307 = vmatprep.subr.bf16.mxu1 %v2705_v0  ;;  %2528 = vmatpush3.bf16.msra.mxu0 %v2942_v29 }
 0x6de   :  { %2529 = vmatprep.subr.bf16.mxu0 %v2707_v34 }
 0x6e0   :  { %2308 = vmatpush3.bf16.msra.mxu1 %v2875_v23 }
 0x6e1   :  { %2309 = vmatprep.subr.bf16.mxu1 %v2705_v0  ;;  %2531 = vmatpush3.bf16.msra.mxu0 %v2948_v36 }
 0x6e2   :  { %2532 = vmatprep.subr.bf16.mxu0 %v2707_v34 }
 0x6e4   :  { %2310 = vmatpush3.bf16.msra.mxu1 %v2880_v24 }
 0x6e5   :  { %2311 = vmatprep.subr.bf16.mxu1 %v2705_v0  ;;  %2534 = vmatpush3.bf16.msra.mxu0 %v2952_v39 }
 0x6e6   :  { %2535 = vmatprep.subr.bf16.mxu0 %v2707_v34 }
 0x6e8   :  { %2312 = vmatpush3.bf16.msra.mxu1 %v2886_v27 }
 0x6e9   :  { %2538 = vmatprep.subr.bf16.mxu1 %v2707_v34  ;;  %2537 = vmatpush3.bf16.msra.mxu0 %v2958_v43 }
 0x6eb   :  { %2314 = vmatmul.mubr.bf16.vlgmr.msra.gmra.mrb[24].mxu1 %v1234_v50 }
 0x6ec   :  { %2540 = vmatpush3.bf16.msra.mxu1 %v2897_v33  ;;  %2391 = vmatprep.mubr.msk.f32.mxu1 %vm2706_vm0, %v2705_v0 }
 0x6ed   :  { %2541 = vmatprep.subr.bf16.mxu1 %v2707_v34 }
 0x6f0   :  { %2543 = vmatpush3.bf16.msra.mxu1 %v2902_v37 }
 0x6f1   :  { %2544 = vmatprep.subr.bf16.mxu1 %v2707_v34 }
 0x6f4   :  { %2546 = vmatpush3.bf16.msra.mxu1 %v2906_v40 }
 0x6f5   :  { %2547 = vmatprep.subr.bf16.mxu1 %v2707_v34 }
 0x6f8   :  { %2549 = vmatpush3.bf16.msra.mxu1 %v2936_v17 }
 0x6f9   :  { %2550 = vmatprep.subr.bf16.mxu1 %v2707_v34 }
 0x6fc   :  { %2552 = vmatpush3.bf16.msra.mxu1 %v2942_v29 }
 0x6fd   :  { %2553 = vmatprep.subr.bf16.mxu1 %v2707_v34 }
 0x700   :  { %2555 = vmatpush3.bf16.msra.mxu1 %v2948_v36 }
 0x701   :  { %2556 = vmatprep.subr.bf16.mxu1 %v2707_v34 }
 0x704   :  { %2558 = vmatpush3.bf16.msra.mxu1 %v2952_v39 }
 0x705   :  { %2559 = vmatprep.subr.bf16.mxu1 %v2707_v34 }
 0x708   :  { %2561 = vmatpush3.bf16.msra.mxu1 %v2958_v43 }
 0x79e   :  { %v2296_v0 = vpop.f32.mrb[20].mxu1  ;;  %v2323_v18 = vpop.f32.mrb[28].mxu0 }
 0x79f   :  { %v1383_v19 = vpop.f32.mrb[21].mxu1  ;;  %v1499_v20 = vpop.f32.mrb[29].mxu0 }
 0x7be   :  { %v1426_v21 = vpop.f32.mrb[24].mxu1 }
 0x7bf   :  { %v1427_v22 = vadd.f32 %v1426_v21, %v1383_v19  ;;  %v2315_v23 = vpop.f32.mrb[25].mxu1 }
 0x7c0   :  { %v1429_v24 = vpop.f32.mrb[26].mxu1 }
 0x7c1   :  { %v1430_v27 = vadd.f32 %v2296_v0, %v1429_v24  ;;  %v1508_v30 = vadd.f32 %v1499_v20, %v1427_v22  ;;  %v2316_v33 = vpop.f32.mrb[27].mxu1 }
 0x7c3   :  { %v1509_v37 = vadd.f32 %v2323_v18, %v1430_v27  ;;  %v1510_v40 = vadd.f32 %v1508_v30, %v2968_v51 }
 0x7c5   :  { %v1511_v55 = vadd.f32 %v1509_v37, %v2966_v49  ;;  %v1519_v57 = vmul.f32 %v1510_v40, %v1510_v40 }
 0x7c7   :  { %v1520_v56 = vmul.f32 %v1511_v55, %v1511_v55  ;;  %v1512_v34 = vadd.f32 %v1511_v55, %v1510_v40 }
 0x7c9   :  { %v1513_v17 = vrot.slane %v1512_v34, 4  ;;  %v1521_v29 = vadd.f32 %v1520_v56, %v1519_v57 }
 0x7cb   :  { %v1514_v36 = vadd.f32 %v1513_v17, %v1512_v34  ;;  %v1522_v39 = vrot.slane %v1521_v29, 4 }
 0x7cd   :  { %v1515_v43 = vrot.slane %v1514_v36, 2  ;;  %v1523_v28 = vadd.f32 %v1522_v39, %v1521_v29 }
 0x7cf   :  { %v1516_v31 = vadd.f32 %v1515_v43, %v1514_v36  ;;  %v1524_v32 = vrot.slane %v1523_v28, 2 }
 0x7d1   :  { %v1517_v35 = vrot.slane %v1516_v31, 1  ;;  %v1525_v38 = vadd.f32 %v1524_v32, %v1523_v28 }
 0x7d3   :  { %v1518_v1 = vadd.f32 %v1517_v35, %v1516_v31  ;;  %v1526_v2 = vrot.slane %v1525_v38, 1 }
 0x7d5   :  { %2357 = vmatmul.mubr.f32.vlgmr.msra.gmra.mrb[30].mxu0 %v1518_v1  ;;  %v1527_v3 = vadd.f32 %v1526_v2, %v1525_v38 }
 0x7d7   :  { %2392 = vmatmul.mubr.f32.vlgmr.msra.gmra.mrb[22].mxu1 %v1527_v3 }
 0x8a8   :  { %v1594_v51 = vpop.f32.mrb[30].mxu0 }
 0x8a9   :  { %v1598_v49 = vmul.f32 0.001953125, %v1594_v51  ;;  %v2358_v4 = vpop.f32.mrb[31].mxu0 }
 0x8aa   :  { %v1665_v5 = vpop.f32.mrb[22].mxu1 }
 0x8ab   :  { %v1670_v6 = vmul.f32 %v1598_v49, %v1598_v49  ;;  %v1669_v7 = vmul.f32 0.001953125, %v1665_v5  ;;  %v2393_v8 = vpop.f32.mrb[23].mxu1  ;;  %v1678_v11 = vrot.slane %v1598_v49, %v3012_v54 }
 0x8ad   :  { %v1671_v9 = vsub.f32 %v1669_v7, %v1670_v6  ;;  %v1679_v14 = vsub.f32 %v1510_v40, %v1678_v11  ;;  %v1680_v15 = vsub.f32 %v1511_v55, %v1678_v11 }
 0x8af   :  { %v1672_v10 = vadd.f32 1e-05, %v1671_v9 }
 0x8b1   :  { %2602 = vrsqrt.f32 %v1672_v10 }
 0x8bb   :  { %v2603_v12 = vpop.eup %2602 }
 0x8bc   :  { %v1674_v13 = vmul.f32 %v2603_v12, %v3017_v59 }
 0x8be   :  { %v1684_v16 = vrot.slane %v1674_v13, %v3012_v54 }
 0x8c0   :  { %v1685_v41 = vmul.f32 %v1684_v16, %v1679_v14  ;;  %v1686_v42 = vmul.f32 %v1684_v16, %v1680_v15 }
 0x8c2   :  { %v1687_v44 = vadd.f32 %v3027_v26, %v1685_v41  ;;  %v1688_v47 = vadd.f32 %v3027_v26, %v1686_v42 }
 0x8c4   :  { %v1689_v48 = vmax.f32 %v1687_v44, 0.0  ;;  %v1690_v50 = vmax.f32 %v1688_v47, 0.0 }
 0x8c6   :  { %1691 = vst [vmem:[#allocation8] sm:$0xff] %v1689_v48  ;;  %1692 = vst [vmem:[#allocation8 + $0x8] sm:$0xff] %v1690_v50 }
 0x8c7   :  { %2681 = shalt.err (!%p2678_p0)
}
 0x8c8   :  { %s2682_s12 = scalar_lea.hbm %s3236_s5, 256 }
 0x8c9   :  { %p2683_p1 = scmp.ne.s32.totalorder %s3236_s5, %s2682_s12  ;;  %p2686_p2 = scmp.lt.u32.totalorder %s2682_s12, %s3236_s5 }
 0x8cb   :  { %p2688_p3 = pnand %p2686_p2, %p2683_p1 }
 0x8cd   :  { %2691 = shalt.err (!%p2688_p3)
}
 0x8ce   :  { %1704 = dma.vmem_to_hbm [thread:$0]  %s1699_s4, 256, %s3236_s5, [#allocation4], %s2703_s0, %s2703_s0, %s2704_s21  }
 0x8cf   :  { %2696 = dma.done.wait [#allocation4], 256  }
 0x8d0   :  { %2697 = vsyncadd [#allocation4], 4294967040 }
 0x8d1   :  { %1708 = vsyncpa [#allocation3], 1 }
 0x8d2   :  { %1709 = vsyncpa [#allocation6], 1 }
 0x8d3   :  { %1710 = vsyncpa [#allocation4], 1 }

</bundles_post_ra>
